<compile_context>
chip_gen: v7x
topology: tpu7x:2x2x1
jax: 0.10.0
libtpu: 0.0.40
codegen_flags: <defaults>
</compile_context>

<pallas_src>
import functools
import math

import jax
import jax.numpy as jnp
from jax import lax
from jax.experimental import pallas as pl
from jax.experimental.pallas import tpu as pltpu


def _biasfree_ln_kernel(x_ref, w_ref, seg_ref, segt_ref, o_ref, *, k, inv_c, eps):
    # x_ref:   (tm, L) lane-dense tile, L = k*C (k tokens per row)
    # w_ref:   (1, L)  weight, k repeated copies of the (C,) parameter
    # seg_ref: (L, k)  0/1 segment matrix (column t selects token t's channels)
    # segt_ref:(k, L)  its transpose (precomputed on host)
    x = x_ref[...].astype(jnp.float32)
    w = w_ref[...].astype(jnp.float32)

    if k == 1:
        # C >= 128 (or unpackable): plain lane reduction (XLU) + broadcast.
        mu = jnp.mean(x, axis=-1, keepdims=True)
        var = jnp.mean(x * x, axis=-1, keepdims=True) - mu * mu
        inv_full = lax.rsqrt(jnp.maximum(var, 0.0) + eps)        # (tm, 1) broadcasts
    else:
        # k tokens packed per 128-lane row: per-token sums via MXU segment
        # matmuls -- the kernel is HBM-bound, so MXU slots are free.
        seg = seg_ref[...]                                        # (L, k)
        segt = segt_ref[...]                                      # (k, L)
        sum_x = jnp.dot(x, seg, precision=lax.Precision.HIGHEST,
                        preferred_element_type=jnp.float32)       # (tm, k)
        sum_x2 = jnp.dot(x * x, seg, precision=lax.Precision.HIGHEST,
                         preferred_element_type=jnp.float32)      # (tm, k)
        mu = sum_x * inv_c
        var = jnp.maximum(sum_x2 * inv_c - mu * mu, 0.0)          # unbiased=False
        inv = lax.rsqrt(var + eps)                                # (tm, k)
        # Broadcast each token's inv back across its C lanes.
        inv_full = jnp.dot(inv, segt, precision=lax.Precision.HIGHEST,
                           preferred_element_type=jnp.float32)    # (tm, L)

    # Note: output does NOT subtract the mean (bias-free LN semantics).
    o_ref[...] = (x * inv_full * w).astype(o_ref.dtype)


def biasfree_layernorm(x, weight, *, eps=1e-5, target_tile_bytes=2 * 1024 * 1024):
    """x: (..., C); weight: (C,). Normalizes over the last axis (bias-free)."""
    orig_shape = x.shape
    C = orig_shape[-1]
    R = math.prod(orig_shape[:-1]) if len(orig_shape) > 1 else 1
    x2d = x.reshape(R, C)

    # ---- lane packing: fold k tokens into the 128-lane axis when C < 128 ----
    k = 1
    if C < 128 and 128 % C == 0:
        k = 128 // C
        while k > 1 and R % k != 0:
            k //= 2
    L = k * C
    Rp = R // k
    xp = x2d.reshape(Rp, L)

    # weight replicated k times along lanes: wp[t*C + c] = weight[c]
    wp = jnp.tile(weight.reshape(1, C), (1, k))                   # (1, L)
    # segment matrix: seg[l, t] = 1 if lane l belongs to token t
    lane_grp = jnp.arange(L, dtype=jnp.int32)[:, None] // C       # (L, 1)
    seg = (lane_grp == jnp.arange(k, dtype=jnp.int32)[None, :]).astype(jnp.float32)
    segt = seg.T                                                  # (k, L)

    # ---- row-tile selection: ~MiB tiles, legal sublane multiple, masked tail ----
    itemsize = jnp.dtype(x.dtype).itemsize
    sub = {4: 8, 2: 16, 1: 32}.get(itemsize, 8)
    tm = max(sub, target_tile_bytes // (L * itemsize))
    tm = min(tm, Rp)
    if Rp >= 2 * sub:                       # keep >= 2 grid steps (v7x dual-TC)
        tm = min(tm, pl.cdiv(Rp, 2))
    if tm < Rp:
        tm = max(sub, (tm // sub) * sub)    # multiple of 8/16, tail is masked
    grid = (pl.cdiv(Rp, tm),)

    kernel = functools.partial(
        _biasfree_ln_kernel, k=k, inv_c=1.0 / float(C), eps=float(eps))

    cost = pl.CostEstimate(
        flops=int(10 * R * C),
        transcendentals=int(R),                       # one rsqrt per token
        bytes_accessed=int((2 * R * C + C) * itemsize),
    )

    out = pl.pallas_call(
        kernel,
        out_shape=jax.ShapeDtypeStruct((Rp, L), x.dtype),
        grid_spec=pltpu.PrefetchScalarGridSpec(
            num_scalar_prefetch=0,
            grid=grid,
            in_specs=[
                pl.BlockSpec((tm, L), lambda i: (i, 0)),   # x rows (streamed)
                pl.BlockSpec((1, L), lambda i: (0, 0)),    # weight (resident)
                pl.BlockSpec((L, k), lambda i: (0, 0)),    # seg   (resident)
                pl.BlockSpec((k, L), lambda i: (0, 0)),    # seg^T (resident)
            ],
            out_specs=pl.BlockSpec((tm, L), lambda i: (i, 0)),
        ),
        compiler_params=pltpu.CompilerParams(
            dimension_semantics=("parallel",),
            vmem_limit_bytes=32 * 1024 * 1024,
        ),
        cost_estimate=cost,
    )(xp, wp, seg, segt)

    return out.reshape(orig_shape)


if __name__ == "__main__":
    key = jax.random.PRNGKey(0)
    k1, k2, k3 = jax.random.split(key, 3)

    # (B, N, C) tokens, as the transformer block feeds this norm.
    B, N, C = 2, 64, 32
    x = jax.random.normal(k1, (B, N, C), dtype=jnp.float32)
    weight = jnp.ones((C,), dtype=jnp.float32)   # nn.Parameter(torch.ones(C))

    y = jax.block_until_ready(biasfree_layernorm(x, weight))
    sigma = jnp.var(x, axis=-1, keepdims=True)
    y_ref = x / jnp.sqrt(sigma + 1e-5) * weight
    assert jnp.allclose(y, y_ref, atol=1e-5, rtol=1e-4), "mismatch (lane-packed path)"

    # Second check: C >= 128 (no lane packing), rows not divisible by the tile
    # (exercises the cdiv grid + masked tail), non-trivial weight.
    B2, N2, C2 = 3, 20, 128
    x2 = jax.random.normal(k2, (B2, N2, C2), dtype=jnp.float32)
    w2 = 1.0 + 0.1 * jax.random.normal(k3, (C2,), dtype=jnp.float32)
    y2 = jax.block_until_ready(biasfree_layernorm(x2, w2))
    sigma2 = jnp.var(x2, axis=-1, keepdims=True)
    y2_ref = x2 / jnp.sqrt(sigma2 + 1e-5) * w2
    assert jnp.allclose(y2, y2_ref, atol=1e-5, rtol=1e-4), "mismatch (k=1 path)"

    print("KERNEL_OK")
</pallas_src>

<mosaic_0001>
module attributes {stable_mosaic.version = 11 : i64} {
  func.func @_biasfree_ln_kernel(%arg0: i32, %arg1: memref<16x128xf32, #tpu.memory_space<vmem>>, %arg2: memref<1x128xf32, #tpu.memory_space<vmem>>, %arg3: memref<128x4xf32, #tpu.memory_space<vmem>>, %arg4: memref<4x128xf32, #tpu.memory_space<vmem>>, %arg5: memref<16x128xf32, #tpu.memory_space<vmem>>) attributes {dimension_semantics = [#tpu.dimension_semantics<parallel>], iteration_bounds = array<i64: 2>, scalar_prefetch = 0 : i64, scratch_operands = 0 : i64, tpu.core_type = #tpu.core_type<tc>, window_params = [{transform_indices = @transform_0, window_bounds = array<i64: 16, 128>}, {pipeline_mode = #tpu.pipeline_mode<synchronous>, transform_indices = @transform_1, window_bounds = array<i64: 1, 128>}, {pipeline_mode = #tpu.pipeline_mode<synchronous>, transform_indices = @transform_2, window_bounds = array<i64: 128, 4>}, {pipeline_mode = #tpu.pipeline_mode<synchronous>, transform_indices = @transform_3, window_bounds = array<i64: 4, 128>}, {transform_indices = @transform_4, window_bounds = array<i64: 16, 128>}]} {
    %c0 = arith.constant 0 : index
    %c0_0 = arith.constant 0 : index
    %0 = vector.load %arg1[%c0, %c0_0] : memref<16x128xf32, #tpu.memory_space<vmem>>, vector<16x128xf32>
    %c0_1 = arith.constant 0 : index
    %c0_2 = arith.constant 0 : index
    %1 = vector.load %arg2[%c0_1, %c0_2] : memref<1x128xf32, #tpu.memory_space<vmem>>, vector<1x128xf32>
    %c0_3 = arith.constant 0 : index
    %c0_4 = arith.constant 0 : index
    %2 = vector.load %arg3[%c0_3, %c0_4] : memref<128x4xf32, #tpu.memory_space<vmem>>, vector<128x4xf32>
    %c0_5 = arith.constant 0 : index
    %c0_6 = arith.constant 0 : index
    %3 = vector.load %arg4[%c0_5, %c0_6] : memref<4x128xf32, #tpu.memory_space<vmem>>, vector<4x128xf32>
    %cst = arith.constant dense<0.000000e+00> : vector<16x4xf32>
    %4 = tpu.matmul %0, %2, %cst {dimension_numbers = #tpu.dot_dimension_numbers<[1], [0], [0], [1], [0, 0, 1, 1], [], []>, precision = #tpu.contract_precision<fp32>} : vector<16x128xf32>, vector<128x4xf32>, vector<16x4xf32> -> vector<16x4xf32>
    %5 = arith.mulf %0, %0 : vector<16x128xf32>
    %cst_7 = arith.constant dense<0.000000e+00> : vector<16x4xf32>
    %6 = tpu.matmul %5, %2, %cst_7 {dimension_numbers = #tpu.dot_dimension_numbers<[1], [0], [0], [1], [0, 0, 1, 1], [], []>, precision = #tpu.contract_precision<fp32>} : vector<16x128xf32>, vector<128x4xf32>, vector<16x4xf32> -> vector<16x4xf32>
    %cst_8 = arith.constant 3.125000e-02 : f32
    %7 = vector.broadcast %cst_8 : f32 to vector<16x4xf32>
    %8 = arith.mulf %4, %7 : vector<16x4xf32>
    %cst_9 = arith.constant 3.125000e-02 : f32
    %9 = vector.broadcast %cst_9 : f32 to vector<16x4xf32>
    %10 = arith.mulf %6, %9 : vector<16x4xf32>
    %11 = arith.mulf %8, %8 : vector<16x4xf32>
    %12 = arith.subf %10, %11 : vector<16x4xf32>
    %cst_10 = arith.constant 0.000000e+00 : f32
    %13 = vector.broadcast %cst_10 : f32 to vector<16x4xf32>
    %14 = arith.maximumf %12, %13 : vector<16x4xf32>
    %cst_11 = arith.constant 9.99999974E-6 : f32
    %15 = vector.broadcast %cst_11 : f32 to vector<16x4xf32>
    %16 = arith.addf %14, %15 : vector<16x4xf32>
    %17 = math.rsqrt %16 : vector<16x4xf32>
    %cst_12 = arith.constant dense<0.000000e+00> : vector<16x128xf32>
    %18 = tpu.matmul %17, %3, %cst_12 {dimension_numbers = #tpu.dot_dimension_numbers<[1], [0], [0], [1], [0, 0, 1, 1], [], []>, precision = #tpu.contract_precision<fp32>} : vector<16x4xf32>, vector<4x128xf32>, vector<16x128xf32> -> vector<16x128xf32>
    %19 = arith.mulf %0, %18 : vector<16x128xf32>
    %20 = vector.broadcast %1 : vector<1x128xf32> to vector<16x128xf32>
    %21 = arith.mulf %19, %20 : vector<16x128xf32>
    %c0_13 = arith.constant 0 : index
    %c0_14 = arith.constant 0 : index
    %22 = vector.load %arg5[%c0_13, %c0_14] : memref<16x128xf32, #tpu.memory_space<vmem>>, vector<16x128xf32>
    tpu.vector_store %arg5[%c0_13, %c0_14], %21 {strides = array<i32>} : memref<16x128xf32, #tpu.memory_space<vmem>>, vector<16x128xf32>,
    return
  }
  func.func @transform_0(%arg0: i32) -> (i32, i32) {
    %c0_i32 = arith.constant 0 : i32
    %c0_i32_0 = arith.constant 0 : i32
    return %arg0, %c0_i32 : i32, i32
  }
  func.func @transform_1(%arg0: i32) -> (i32, i32) {
    %c0_i32 = arith.constant 0 : i32
    %c0_i32_0 = arith.constant 0 : i32
    %c0_i32_1 = arith.constant 0 : i32
    return %c0_i32, %c0_i32_0 : i32, i32
  }
  func.func @transform_2(%arg0: i32) -> (i32, i32) {
    %c0_i32 = arith.constant 0 : i32
    %c0_i32_0 = arith.constant 0 : i32
    %c0_i32_1 = arith.constant 0 : i32
    return %c0_i32, %c0_i32_0 : i32, i32
  }
  func.func @transform_3(%arg0: i32) -> (i32, i32) {
    %c0_i32 = arith.constant 0 : i32
    %c0_i32_0 = arith.constant 0 : i32
    %c0_i32_1 = arith.constant 0 : i32
    return %c0_i32, %c0_i32_0 : i32, i32
  }
  func.func @transform_4(%arg0: i32) -> (i32, i32) {
    %c0_i32 = arith.constant 0 : i32
    %c0_i32_0 = arith.constant 0 : i32
    return %arg0, %c0_i32 : i32, i32
  }
}

</mosaic_0001>

<bundles_post_ra>
// kernel: tpu_custom_call.1
= control target key start
LH: loop header
LB: loop body
LE: loop exit
PB: predicated region body
PF: predicated region fallthrough
CT: control target
= control target key end

     0   :  { %9 = vsyncpa [#allocation3], 0  ;;  %s3986_s0 = inlined_call_operand.vmem [shape: f32[32,128], index: 0, kind: input, shape index: {}]   ;;  %s3987_s1 = inlined_call_operand.vmem [shape: f32[1,128], index: 1, kind: input, shape index: {}]   ;;  %s3988_s2 = inlined_call_operand.vmem [shape: f32[128,4], index: 2, kind: input, shape index: {}]   ;;  %s3989_s3 = inlined_call_operand.vmem [shape: f32[4,128], index: 3, kind: input, shape index: {}]   ;;  %s3990_s4 = inlined_call_operand.hbm [shape: f32[32,128], index: 4, kind: output, shape index: {}]  }
   0x1   :  { %11 = vsyncpa [#allocation3 + $0x1], 0  ;;  %s3440_s15 = smov 0   ;;  %s3442_s16 = smov 0  }
   0x2   :  { %s3444_s17 = smov 0   ;;  %s3446_s18 = smov 0  }
   0x3 LB: > { %s3461_s19 = sadd.s32 4294967295, %s3410_s18   ;;  %s2191_s20 = sadd.s32 4294967294, %s3410_s18   ;;  %s3410_s18 = sphi %s3446_s18, %s4004_s18   ;;  %s3406_s17 = sphi %s3444_s17, %s4003_s17   ;;  %s3402_s16 = sphi %s3442_s16, %s4002_s16   ;;  %s3398_s15 = sphi %s3440_s15, %s4001_s15  }
   0x4   : > { %s3465_s21 = sadd.s32 1, %s3410_s18   ;;  %s113_s22 = sadd.s32 1, %s3406_s17 }
   0x5   : > { %s110_s23 = ssub.s32 %s3410_s18, %s3465_s21  ;;  %p123_p0 = scmp.ne.s32.totalorder %s3406_s17, %s3402_s16 }
   0x6   : > { %p111_p1 = scmp.eq.s32.totalorder %s110_s23, 0  ;;  %p124_p2 = scmp.eq.s32.totalorder %s3461_s19, 1 }
   0x7   : > { %p129_p3 = scmp.ne.s32.totalorder %s3402_s16, %s3398_s15  ;;  %p130_p4 = scmp.eq.s32.totalorder %s2191_s20, 1 }
   0x8   : > { %s3476_s24 = scalar_select %p111_p1, %s3406_s17, %s113_s22  }
   0x9   : > { %p3478_p5 = por %p124_p2, %p123_p0  ;;  %p3482_p6 = por %p130_p4, %p129_p3 }
   0xa   : > { %p2194_p7 = scmp.ge.s32.totalorder %s3410_s18, 1  ;;  %p166_p8 = scmp.lt.s32.totalorder %s3410_s18, 3 }
   0xc   : > { %p167_p9 = pnand %p2194_p7, %p166_p8 }
   0xd   : > { %v202_v0 = vld [vmem:[%s3988_s2] sm:$0xff] (!%p167_p9)  ;;  %v203_v1 = vld [vmem:[%s3988_s2 + $0x8] sm:$0xff] (!%p167_p9)  ;;  %v204_v2 = vld [vmem:[%s3988_s2 + $0x10] sm:$0xff] (!%p167_p9)  ;;  %s2196_s7 = sshll.u32 (!%p167_p9), %s3461_s19, 1  ;;  %vm1610_vm0 = vcmask (!%p167_p9), 1043456   ;;  %vm1603_vm1 = vcmask (!%p167_p9), 31744  }
   0xe   : > { %170 = sbr.rel (%p167_p9) target bundleno = 706 (0x2c2), region = 36  ;;  %v220_v3 = vand.u32 (!%p167_p9), 4294901760, %v202_v0  ;;  %v223_v4 = vand.u32 (!%p167_p9), 4294901760, %v203_v1  ;;  %v205_v5 = vld [vmem:[%s3988_s2 + $0x18] sm:$0xff] (!%p167_p9)  ;;  %v226_v6 = vand.u32 (!%p167_p9), 4294901760, %v204_v2  ;;  %v3504_v7 = vld [vmem:[%s3988_s2 + $0x20] sm:$0xff] (!%p167_p9) }
   0xf   : > { %v3509_v8 = vld [vmem:[%s3988_s2 + $0x28] sm:$0xff] (!%p167_p9)  ;;  %v229_v9 = vand.u32 (!%p167_p9), 4294901760, %v205_v5  ;;  %v232_v11 = vand.u32 (!%p167_p9), 4294901760, %v3504_v7  ;;  %v3520_v14 = vld [vmem:[%s3988_s2 + $0x30] sm:$0xff] (!%p167_p9)  ;;  %v3525_v15 = vld [vmem:[%s3988_s2 + $0x38] sm:$0xff] (!%p167_p9)  ;;  %p193_p10 = scmp.lt.s32.totalorder (!%p167_p9), %s2196_s7, 3 }
  0x10   : > { %v3511_v10 = vpack.c.bf16 (!%p167_p9), %v223_v4, %v220_v3  ;;  %v235_v12 = vand.u32 (!%p167_p9), 4294901760, %v3509_v8  ;;  %v238_v17 = vand.u32 (!%p167_p9), 4294901760, %v3520_v14  ;;  %v241_v18 = vand.u32 (!%p167_p9), 4294901760, %v3525_v15  ;;  %v3544_v19 = vld [vmem:[%s3988_s2 + $0x40] sm:$0xff] (!%p167_p9)  ;;  %v3549_v20 = vld [vmem:[%s3988_s2 + $0x48] sm:$0xff] (!%p167_p9)  ;;  %v3573_v26 = vld [vmem:[%s3988_s2 + $0x50] sm:$0xff] (!%p167_p9) }
  0x11   : > { %v3515_v13 = vpack.c.bf16 (!%p167_p9), %v229_v9, %v226_v6  ;;  %v244_v21 = vand.u32 (!%p167_p9), 4294901760, %v3544_v19  ;;  %v247_v25 = vand.u32 (!%p167_p9), 4294901760, %v3549_v20  ;;  %v3583_v29 = vld [vmem:[%s3988_s2 + $0x58] sm:$0xff] (!%p167_p9)  ;;  %v3585_v30 = vsub.f32 (!%p167_p9), %v202_v0, %v220_v3  ;;  %v214_v42 = vld [vmem:[%s3988_s2 + $0x60] sm:$0xff] (!%p167_p9)  ;;  %v215_v45 = vld [vmem:[%s3988_s2 + $0x68] sm:$0xff] (!%p167_p9)  ;;  %s189_s6 = sand.u32 (!%p167_p9), 1, %s3402_s16  }
  0x12   : > { %2890 = vmatprep.subr.bf16.mxu0 (!%p167_p9), %v3511_v10  ;;  %3082 = vmatprep.subr.bf16.mxu1 (!%p167_p9), %v3511_v10  ;;  %v3537_v16 = vpack.c.bf16 (!%p167_p9), %v235_v12, %v232_v11  ;;  %v3567_v24 = vpack.c.bf16 (!%p167_p9), %v241_v18, %v238_v17  ;;  %v3587_v31 = vsub.f32 (!%p167_p9), %v203_v1, %v223_v4  ;;  %v250_v37 = vand.u32 (!%p167_p9), 4294901760, %v3573_v26  ;;  %v216_v48 = vld [vmem:[%s3988_s2 + $0x70] sm:$0xff] (!%p167_p9)  ;;  %v217_v49 = vld [vmem:[%s3988_s2 + $0x78] sm:$0xff] (!%p167_p9)  ;;  %s2195_s8 = sshll.u32 (!%p167_p9), %s189_s6, 4  ;;  %s2204_s12 = sshll.u32 (!%p167_p9), %s3461_s19, 8 }
  0x13   : > { %2892 = vmatpush3.bf16.msra.mxu0 (!%p167_p9), %v3511_v10  ;;  %3084 = vmatpush3.bf16.msra.mxu1 (!%p167_p9), %v3511_v10  ;;  %v3597_v35 = vsub.f32 (!%p167_p9), %v204_v2, %v226_v6  ;;  %v3599_v36 = vsub.f32 (!%p167_p9), %v205_v5, %v229_v9  ;;  %v3615_v40 = vpack.c.bf16 (!%p167_p9), %v247_v25, %v244_v21  ;;  %v253_v41 = vand.u32 (!%p167_p9), 4294901760, %v3583_v29  ;;  %s191_s10 = scalar_lea.vmem (!%p167_p9), [#allocation2], %s2195_s8  ;;  %s3943_s20 = scalar_lea.hbm (!%p167_p9), %s3990_s4, %s2204_s12 }
  0x14   : > { %2894 = vmatprep.subr.bf16.mxu0 (!%p167_p9), %v3515_v13  ;;  %3086 = vmatprep.subr.bf16.mxu1 (!%p167_p9), %v3515_v13  ;;  %v323_v46 = vand.u32 (!%p167_p9), 4294901760, %v3585_v30  ;;  %v330_v47 = vand.u32 (!%p167_p9), 4294901760, %v3587_v31  ;;  %v256_v54 = vand.u32 (!%p167_p9), 4294901760, %v214_v42  ;;  %v259_v58 = vand.u32 (!%p167_p9), 4294901760, %v215_v45  ;;  %s2129_s11 = sshll.u32 (!%p167_p9), %s191_s10, 4  ;;  %s3945_s22 = scalar_lea.sflag (!%p167_p9), [#allocation3], %s189_s6  ;;  %s3938_s11 = int_to_ptr.vmem [resolvable:$true] %s2129_s11 }
  0x15   : > { %s4006_s7 = smov (!%p193_p10, %s2196_s7), 3  ;;  %v337_v52 = vand.u32 4294901760, %v3597_v35  ;;  %v344_v53 = vand.u32 4294901760, %v3599_v36  ;;  %v3655_v57 = vpack.c.bf16 %v253_v41, %v250_v37  ;;  %v262_v61 = vand.u32 4294901760, %v216_v48  ;;  %s3348_s19 = scalar_lea.vmem %s3938_s11, 256 }
  0x16   : > { %s2197_s5 = sshll.u32 %s4006_s7, 3  ;;  %v265_v62 = vand.u32 4294901760, %v217_v49  ;;  %v324_v63 = vsub.f32 %v3585_v30, %v323_v46  ;;  %v3666_v0 = vsub.f32 %v3504_v7, %v232_v11  ;;  %v331_v1 = vsub.f32 %v3587_v31, %v330_v47  ;;  %p3349_p11 = scmp.ne.s32.totalorder %s3938_s11, %s3348_s19 }
  0x17   : > { %s196_s9 = scalar_lea.vmem %s3986_s0, %s2197_s5  ;;  %2896 = vmatpush3.bf16.msra.mxu0 %v3515_v13  ;;  %3088 = vmatpush3.bf16.msra.mxu1 %v3515_v13  ;;  %v338_v3 = vsub.f32 %v3597_v35, %v337_v52  ;;  %v345_v4 = vsub.f32 %v3599_v36, %v344_v53  ;;  %v3684_v7 = vsub.f32 %v3509_v8, %v235_v12  ;;  %s3412_s23 = smov [#allocation2]  }
  0x18   : > { %v3557_v22 = vld [vmem:[%s196_s9] sm:$0xff]  ;;  %v3559_v23 = vld [vmem:[%s196_s9 + $0x8] sm:$0xff]  ;;  %2898 = vmatprep.subr.bf16.mxu0 %v3537_v16  ;;  %3090 = vmatprep.subr.bf16.mxu1 %v3537_v16  ;;  %v3689_v9 = vsub.f32 %v3520_v14, %v238_v17  ;;  %v3693_v11 = vpack.c.bf16 %v259_v58, %v256_v54  ;;  %v3700_v8 = vsub.f32 %v3525_v15, %v241_v18  ;;  %v332_v12 = vand.u32 4294901760, %v331_v1  ;;  %p3350_p12 = pnand %p3349_p11, %p3478_p5  ;;  %s3352_s27 = sshll.u32 %s3412_s23, 4  ;;  %s3353_s27 = int_to_ptr.vmem [resolvable:$false] %s3352_s27 }
  0x19   : > { %v3576_v27 = vand.u32 4294901760, %v3557_v22  ;;  %v903_v28 = vmul.f32 %v3557_v22, %v3557_v22  ;;  %v904_v32 = vmul.f32 %v3559_v23, %v3559_v23  ;;  %v3605_v38 = vand.u32 4294901760, %v3559_v23  ;;  %s3354_s28 = scalar_lea.vmem %s3353_s27, 512  ;;  %p3355_p0 = scmp.lt.s32.totalorder %s3938_s11, %s3353_s27 }
  0x1a   : > { %v351_v14 = vand.u32 4294901760, %v3666_v0  ;;  %v358_v15 = vand.u32 4294901760, %v3684_v7  ;;  %v365_v18 = vand.u32 4294901760, %v3689_v9  ;;  %v3723_v1 = vsub.f32 %v3549_v20, %v247_v25  ;;  %p3351_p13 = pneg %p3350_p12  ;;  %p3356_p1 = scmp.lt.s32.totalorder %s3354_s28, %s3348_s19 }
  0x1b   : > { %v3593_v33 = vsub.f32 %v3557_v22, %v3576_v27  ;;  %v3595_v34 = vand.u32 4294901760, %v903_v28  ;;  %2900 = vmatpush3.bf16.msra.mxu0 %v3537_v16  ;;  %3092 = vmatpush3.bf16.msra.mxu1 %v3537_v16  ;;  %v3607_v39 = vand.u32 4294901760, %v904_v32  ;;  %v3646_v55 = vsub.f32 %v3559_v23, %v3605_v38 }
  0x1c   : > { %2902 = vmatprep.subr.bf16.mxu0 %v3567_v24  ;;  %3094 = vmatprep.subr.bf16.mxu1 %v3567_v24  ;;  %v3740_v20 = vsub.f32 %v217_v49, %v265_v62  ;;  %p3357_p2 = por %p3356_p1, %p3355_p0 }
  0x1d   : > { %v3994_v43 = vand.u32 4294901760, %v3593_v33  ;;  %v3623_v44 = vsub.f32 %v903_v28, %v3595_v34  ;;  %v3649_v56 = vsub.f32 %v904_v32, %v3607_v39  ;;  %v3992_v5 = vand.u32 4294901760, %v3646_v55 }
  0x1e   : > { %v3695_v28 = vpack.c.bf16 %v265_v62, %v262_v61  ;;  %v325_v32 = vand.u32 4294901760, %v324_v63  ;;  %v3718_v63 = vsub.f32 %v3544_v19, %v244_v21  ;;  %v428_v62 = vand.u32 4294901760, %v3740_v20  ;;  %p3358_p3 = pnand %p3357_p2, %p3351_p13 }
  0x1f   : > { %v303_v50 = vsub.f32 %v3593_v33, %v3994_v43  ;;  %v3993_v51 = vand.u32 4294901760, %v3623_v44  ;;  %2904 = vmatpush3.bf16.msra.mxu0 %v3567_v24  ;;  %3096 = vmatpush3.bf16.msra.mxu1 %v3567_v24  ;;  %v3991_v6 = vand.u32 4294901760, %v3649_v56  ;;  %v313_v17 = vsub.f32 %v3646_v55, %v3992_v5 }
  0x20   : > { %2906 = vmatprep.subr.bf16.mxu0 %v3615_v40  ;;  %3098 = vmatprep.subr.bf16.mxu1 %v3615_v40  ;;  %v3737_v5 = vsub.f32 %v216_v48, %v262_v61  ;;  %v2921_v19 = vpack.c.bf16 %v332_v12, %v325_v32  ;;  %v3761_v32 = vpack.c.bf16 %v330_v47, %v323_v46 }
  0x21   : > { %v304_v59 = vand.u32 4294901760, %v303_v50  ;;  %v989_v60 = vsub.f32 %v3623_v44, %v3993_v51  ;;  %v339_v50 = vand.u32 4294901760, %v338_v3  ;;  %v3731_v3 = vsub.f32 %v3583_v29, %v253_v41 }
  0x22   : > { %v352_v51 = vsub.f32 %v3666_v0, %v351_v14  ;;  %v314_v25 = vand.u32 4294901760, %v313_v17  ;;  %v366_v29 = vsub.f32 %v3689_v9, %v365_v18  ;;  %v421_v61 = vand.u32 4294901760, %v3737_v5 }
  0x23   : > { %2471 = vmatprep.mubr.f32.mxu0 %v304_v59  ;;  %v990_v2 = vand.u32 4294901760, %v989_v60  ;;  %2908 = vmatpush3.bf16.msra.mxu0 %v3615_v40  ;;  %v346_v59 = vand.u32 4294901760, %v345_v4  ;;  %v999_v60 = vsub.f32 %v3649_v56, %v3991_v6  ;;  %v3733_v4 = vsub.f32 %v214_v42, %v256_v54 }
  0x24   : > { %3100 = vmatpush3.bf16.msra.mxu1 %v3615_v40  ;;  %2910 = vmatprep.subr.bf16.mxu0 %v3655_v57  ;;  %v3735_v6 = vsub.f32 %v215_v45, %v259_v58  ;;  %v379_v42 = vand.u32 4294901760, %v3718_v63  ;;  %v386_v45 = vand.u32 4294901760, %v3723_v1  ;;  %v400_v49 = vand.u32 4294901760, %v3731_v3 }
  0x25   : > { %3102 = vmatprep.subr.bf16.mxu1 %v3655_v57  ;;  %2681 = vmatprep.mubr.f32.mxu1 %v990_v2  ;;  %v3728_v2 = vsub.f32 %v3573_v26, %v250_v37  ;;  %v2925_v21 = vpack.c.bf16 %v346_v59, %v339_v50  ;;  %v359_v26 = vsub.f32 %v3684_v7, %v358_v15  ;;  %v372_v37 = vand.u32 4294901760, %v3700_v8 }
  0x26   : > { %v1000_v41 = vand.u32 4294901760, %v999_v60  ;;  %v407_v54 = vand.u32 4294901760, %v3733_v4  ;;  %v414_v58 = vand.u32 4294901760, %v3735_v6  ;;  %v3767_v12 = vpack.c.bf16 %v344_v53, %v337_v52 }
  0x27   : > { %2912 = vmatpush3.bf16.msra.mxu0 %v3655_v57  ;;  %v393_v48 = vand.u32 4294901760, %v3728_v2  ;;  %v3769_v50 = vpack.c.bf16 %v358_v15, %v351_v14  ;;  %v353_v59 = vand.u32 4294901760, %v352_v51  ;;  %v373_v17 = vsub.f32 %v3700_v8, %v372_v37 }
  0x28   : > { %3104 = vmatpush3.bf16.msra.mxu1 %v3655_v57  ;;  %2914 = vmatprep.subr.bf16.mxu0 %v3693_v11  ;;  %v3774_v60 = vpack.c.bf16 %v372_v37, %v365_v18  ;;  %v3776_v43 = vpack.c.bf16 %v386_v45, %v379_v42  ;;  %v360_v46 = vand.u32 4294901760, %v359_v26  ;;  %v3780_v52 = vpack.c.bf16 %v414_v58, %v407_v54 }
  0x29   : > { %3106 = vmatprep.subr.bf16.mxu1 %v3693_v11  ;;  %v3778_v47 = vpack.c.bf16 %v400_v49, %v393_v48  ;;  %v3782_v53 = vpack.c.bf16 %v428_v62, %v421_v61  ;;  %v367_v51 = vand.u32 4294901760, %v366_v29  ;;  %v374_v15 = vand.u32 4294901760, %v373_v17 }
  0x2a   : > { %v2929_v14 = vpack.c.bf16 %v360_v46, %v353_v59  ;;  %v380_v18 = vsub.f32 %v3718_v63, %v379_v42  ;;  %v387_v37 = vsub.f32 %v3723_v1, %v386_v45  ;;  %v408_v17 = vsub.f32 %v3733_v4, %v407_v54 }
  0x2b   : > { %2916 = vmatpush3.bf16.msra.mxu0 %v3693_v11 }
  0x2c   : > { %3108 = vmatpush3.bf16.msra.mxu1 %v3693_v11  ;;  %2918 = vmatprep.subr.bf16.mxu0 %v3695_v28  ;;  %v381_v26 = vand.u32 4294901760, %v380_v18  ;;  %v388_v29 = vand.u32 4294901760, %v387_v37  ;;  %v2961_v37 = vpack.c.bf16 %v3684_v7, %v3666_v0  ;;  %v2981_v0 = vpack.c.bf16 %v3740_v20, %v3737_v5 }
  0x2d   : > { %3110 = vmatprep.subr.bf16.mxu1 %v3695_v28 }
  0x2e   : > { %v2937_v45 = vpack.c.bf16 %v388_v29, %v381_v26 }
  0x2f   : > { %2920 = vmatpush3.bf16.msra.mxu0 %v3695_v28 }
  0x30   : > { %3112 = vmatpush3.bf16.msra.mxu1 %v3695_v28  ;;  %2922 = vmatprep.subr.bf16.mxu0 %v2921_v19 }
  0x31   : > { %3114 = vmatprep.subr.bf16.mxu1 %v2921_v19 }
  0x32   : > { %2472 = vmatmul.mubr.f32.vlgmr.msra.gmra.mrb[0].mxu0 %v314_v25  ;;  %v394_v25 = vsub.f32 %v3728_v2, %v393_v48  ;;  %v422_v48 = vsub.f32 %v3737_v5, %v421_v61  ;;  %v2953_v61 = vpack.c.bf16 %v3587_v31, %v3585_v30  ;;  %v2965_v30 = vpack.c.bf16 %v3700_v8, %v3689_v9 }
  0x33   : > { %2682 = vmatmul.mubr.f32.vlgmr.msra.gmra.mrb[0].mxu1 %v1000_v41  ;;  %2924 = vmatpush3.bf16.msra.mxu0 %v2921_v19  ;;  %v401_v41 = vsub.f32 %v3731_v3, %v400_v49  ;;  %v2969_v31 = vpack.c.bf16 %v3723_v1, %v3718_v63  ;;  %v3997_v5 = vand.u32 4294901760, %v3593_v33 }
  0x34   : > { %3116 = vmatpush3.bf16.msra.mxu1 %v2921_v19  ;;  %2926 = vmatprep.subr.bf16.mxu0 %v2925_v21  ;;  %v2933_v19 = vpack.c.bf16 %v374_v15, %v367_v51  ;;  %v395_v42 = vand.u32 4294901760, %v394_v25  ;;  %v409_v51 = vand.u32 4294901760, %v408_v17  ;;  %v423_v18 = vand.u32 4294901760, %v422_v48 }
  0x35   : > { %3118 = vmatprep.subr.bf16.mxu1 %v2925_v21  ;;  %2506 = vmatprep.mubr.f32.mxu0 %v3576_v27  ;;  %v402_v59 = vand.u32 4294901760, %v401_v41 }
  0x36   : > { %2716 = vmatprep.mubr.f32.mxu1 %v3595_v34 }
  0x37   : > { %2928 = vmatpush3.bf16.msra.mxu0 %v2925_v21  ;;  %v2941_v46 = vpack.c.bf16 %v402_v59, %v395_v42 }
  0x38   : > { %3120 = vmatpush3.bf16.msra.mxu1 %v2925_v21  ;;  %2930 = vmatprep.subr.bf16.mxu0 %v2929_v14  ;;  %v415_v21 = vsub.f32 %v3735_v6, %v414_v58 }
  0x39   : > { %3122 = vmatprep.subr.bf16.mxu1 %v2929_v14 }
  0x3a   : > { %v416_v49 = vand.u32 4294901760, %v415_v21 }
  0x3b   : > { %2932 = vmatpush3.bf16.msra.mxu0 %v2929_v14 }
  0x3c   : > { %3124 = vmatpush3.bf16.msra.mxu1 %v2929_v14  ;;  %2934 = vmatprep.subr.bf16.mxu0 %v2933_v19  ;;  %v429_v14 = vsub.f32 %v3740_v20, %v428_v62  ;;  %v2945_v15 = vpack.c.bf16 %v416_v49, %v409_v51  ;;  %v2957_v62 = vpack.c.bf16 %v3599_v36, %v3597_v35 }
  0x3d   : > { %3126 = vmatprep.subr.bf16.mxu1 %v2933_v19  ;;  %v2973_v35 = vpack.c.bf16 %v3731_v3, %v3728_v2  ;;  %v2977_v36 = vpack.c.bf16 %v3735_v6, %v3733_v4  ;;  %v3998_v6 = vand.u32 4294901760, %v3623_v44 }
  0x3e   : > { %v430_v54 = vand.u32 4294901760, %v429_v14 }
  0x3f   : > { %2936 = vmatpush3.bf16.msra.mxu0 %v2933_v19 }
  0x40   : > { %3128 = vmatpush3.bf16.msra.mxu1 %v2933_v19  ;;  %2938 = vmatprep.subr.bf16.mxu0 %v2937_v45  ;;  %v2949_v58 = vpack.c.bf16 %v430_v54, %v423_v18 }
  0x41   : > { %3130 = vmatprep.subr.bf16.mxu1 %v2937_v45 }
  0x43   : > { %2940 = vmatpush3.bf16.msra.mxu0 %v2937_v45 }
  0x44   : > { %3132 = vmatpush3.bf16.msra.mxu1 %v2937_v45  ;;  %2942 = vmatprep.subr.bf16.mxu0 %v2941_v46 }
  0x45   : > { %3134 = vmatprep.subr.bf16.mxu1 %v2941_v46 }
  0x47   : > { %2944 = vmatpush3.bf16.msra.mxu0 %v2941_v46 }
  0x48   : > { %3136 = vmatpush3.bf16.msra.mxu1 %v2941_v46  ;;  %2946 = vmatprep.subr.bf16.mxu0 %v2945_v15  ;;  %v2198_v46 = vld [vmem:[%s3987_s1] ss:$0 sm:$0xff] }
  0x49   : > { %3138 = vmatprep.subr.bf16.mxu1 %v2945_v15 }
  0x4b   : > { %2948 = vmatpush3.bf16.msra.mxu0 %v2945_v15 }
  0x4c   : > { %3140 = vmatpush3.bf16.msra.mxu1 %v2945_v15  ;;  %2950 = vmatprep.subr.bf16.mxu0 %v2949_v58 }
  0x4d   : > { %3142 = vmatprep.subr.bf16.mxu1 %v2949_v58 }
  0x4f   : > { %2952 = vmatpush3.bf16.msra.mxu0 %v2949_v58 }
  0x50   : > { %3144 = vmatpush3.bf16.msra.mxu1 %v2949_v58  ;;  %2954 = vmatprep.subr.bf16.mxu0 %v2953_v61 }
  0x51   : > { %3146 = vmatprep.subr.bf16.mxu1 %v2953_v61 }
  0x52   : > { %2507 = vmatmul.mubr.f32.vlgmr.msra.gmra.mrb[0].mxu0 %v3605_v38 }
  0x53   : > { %2717 = vmatmul.mubr.f32.vlgmr.msra.gmra.mrb[0].mxu1 %v3607_v39  ;;  %2956 = vmatpush3.bf16.msra.mxu0 %v2953_v61 }
  0x54   : > { %3148 = vmatpush3.bf16.msra.mxu1 %v2953_v61  ;;  %2958 = vmatprep.subr.bf16.mxu0 %v2957_v62 }
  0x55   : > { %3150 = vmatprep.subr.bf16.mxu1 %v2957_v62  ;;  %2541 = vmatprep.mubr.f32.mxu0 %v3593_v33  ;;  %v3999_v33 = vand.u32 4294901760, %v3646_v55 }
  0x56   : > { %2751 = vmatprep.mubr.f32.mxu1 %v3623_v44  ;;  %v4000_v44 = vand.u32 4294901760, %v3649_v56 }
  0x57   : > { %2960 = vmatpush3.bf16.msra.mxu0 %v2957_v62 }
  0x58   : > { %3152 = vmatpush3.bf16.msra.mxu1 %v2957_v62  ;;  %2962 = vmatprep.subr.bf16.mxu0 %v2961_v37 }
  0x59   : > { %3154 = vmatprep.subr.bf16.mxu1 %v2961_v37 }
  0x5b   : > { %2964 = vmatpush3.bf16.msra.mxu0 %v2961_v37 }
  0x5c   : > { %3156 = vmatpush3.bf16.msra.mxu1 %v2961_v37  ;;  %2966 = vmatprep.subr.bf16.mxu0 %v2965_v30 }
  0x5d   : > { %3158 = vmatprep.subr.bf16.mxu1 %v2965_v30 }
  0x5f   : > { %2968 = vmatpush3.bf16.msra.mxu0 %v2965_v30 }
  0x60   : > { %3160 = vmatpush3.bf16.msra.mxu1 %v2965_v30  ;;  %2970 = vmatprep.subr.bf16.mxu0 %v2969_v31 }
  0x61   : > { %3162 = vmatprep.subr.bf16.mxu1 %v2969_v31 }
  0x63   : > { %2972 = vmatpush3.bf16.msra.mxu0 %v2969_v31 }
  0x64   : > { %3164 = vmatpush3.bf16.msra.mxu1 %v2969_v31  ;;  %2974 = vmatprep.subr.bf16.mxu0 %v2973_v35 }
  0x65   : > { %3166 = vmatprep.subr.bf16.mxu1 %v2973_v35 }
  0x67   : > { %2976 = vmatpush3.bf16.msra.mxu0 %v2973_v35 }
  0x68   : > { %3168 = vmatpush3.bf16.msra.mxu1 %v2973_v35  ;;  %2978 = vmatprep.subr.bf16.mxu0 %v2977_v36 }
  0x69   : > { %3170 = vmatprep.subr.bf16.mxu1 %v2977_v36 }
  0x6b   : > { %2980 = vmatpush3.bf16.msra.mxu0 %v2977_v36 }
  0x6c   : > { %3172 = vmatpush3.bf16.msra.mxu1 %v2977_v36  ;;  %2982 = vmatprep.subr.bf16.mxu0 %v2981_v0 }
  0x6d   : > { %3174 = vmatprep.subr.bf16.mxu1 %v2981_v0 }
  0x6f   : > { %2984 = vmatpush3.bf16.msra.mxu0 %v2981_v0 }
  0x70   : > { %3176 = vmatpush3.bf16.msra.mxu1 %v2981_v0  ;;  %2986 = vmatprep.subr.bf16.mxu0 %v3511_v10 }
  0x71   : > { %3178 = vmatprep.subr.bf16.mxu1 %v3511_v10 }
  0x72   : > { %2542 = vmatmul.mubr.f32.vlgmr.msra.gmra.mrb[0].mxu0 %v3646_v55 }
  0x73   : > { %2752 = vmatmul.mubr.f32.vlgmr.msra.gmra.mrb[0].mxu1 %v3649_v56  ;;  %2988 = vmatpush3.bf16.msra.mxu0 %v3511_v10 }
  0x74   : > { %3180 = vmatpush3.bf16.msra.mxu1 %v3511_v10  ;;  %2990 = vmatprep.subr.bf16.mxu0 %v3515_v13 }
  0x75   : > { %3182 = vmatprep.subr.bf16.mxu1 %v3515_v13  ;;  %2576 = vmatprep.mubr.f32.mxu0 %v3997_v5 }
  0x76   : > { %2786 = vmatprep.mubr.f32.mxu1 %v3998_v6 }
  0x77   : > { %2992 = vmatpush3.bf16.msra.mxu0 %v3515_v13 }
  0x78   : > { %3184 = vmatpush3.bf16.msra.mxu1 %v3515_v13  ;;  %2994 = vmatprep.subr.bf16.mxu0 %v3537_v16 }
  0x79   : > { %3186 = vmatprep.subr.bf16.mxu1 %v3537_v16 }
  0x7b   : > { %2996 = vmatpush3.bf16.msra.mxu0 %v3537_v16 }
  0x7c   : > { %3188 = vmatpush3.bf16.msra.mxu1 %v3537_v16  ;;  %2998 = vmatprep.subr.bf16.mxu0 %v3567_v24 }
  0x7d   : > { %3190 = vmatprep.subr.bf16.mxu1 %v3567_v24 }
  0x7f   : > { %3000 = vmatpush3.bf16.msra.mxu0 %v3567_v24 }
  0x80   : > { %3192 = vmatpush3.bf16.msra.mxu1 %v3567_v24  ;;  %3002 = vmatprep.subr.bf16.mxu0 %v3615_v40 }
  0x81   : > { %3194 = vmatprep.subr.bf16.mxu1 %v3615_v40 }
  0x83   : > { %3004 = vmatpush3.bf16.msra.mxu0 %v3615_v40 }
  0x84   : > { %3196 = vmatpush3.bf16.msra.mxu1 %v3615_v40  ;;  %3006 = vmatprep.subr.bf16.mxu0 %v3655_v57 }
  0x85   : > { %3198 = vmatprep.subr.bf16.mxu1 %v3655_v57 }
  0x87   : > { %3008 = vmatpush3.bf16.msra.mxu0 %v3655_v57 }
  0x88   : > { %3200 = vmatpush3.bf16.msra.mxu1 %v3655_v57  ;;  %3010 = vmatprep.subr.bf16.mxu0 %v3693_v11 }
  0x89   : > { %3202 = vmatprep.subr.bf16.mxu1 %v3693_v11 }
  0x8b   : > { %3012 = vmatpush3.bf16.msra.mxu0 %v3693_v11 }
  0x8c   : > { %3204 = vmatpush3.bf16.msra.mxu1 %v3693_v11  ;;  %3014 = vmatprep.subr.bf16.mxu0 %v3695_v28 }
  0x8d   : > { %3206 = vmatprep.subr.bf16.mxu1 %v3695_v28 }
  0x8f   : > { %3016 = vmatpush3.bf16.msra.mxu0 %v3695_v28 }
  0x90   : > { %3208 = vmatpush3.bf16.msra.mxu1 %v3695_v28  ;;  %3018 = vmatprep.subr.bf16.mxu0 %v3761_v32 }
  0x91   : > { %3210 = vmatprep.subr.bf16.mxu1 %v3761_v32 }
  0x92   : > { %2577 = vmatmul.mubr.f32.vlgmr.msra.gmra.mrb[0].mxu0 %v3999_v33 }
  0x93   : > { %2787 = vmatmul.mubr.f32.vlgmr.msra.gmra.mrb[0].mxu1 %v4000_v44  ;;  %3020 = vmatpush3.bf16.msra.mxu0 %v3761_v32 }
  0x94   : > { %3212 = vmatpush3.bf16.msra.mxu1 %v3761_v32  ;;  %3022 = vmatprep.subr.bf16.mxu0 %v3767_v12 }
  0x95   : > { %3214 = vmatprep.subr.bf16.mxu1 %v3767_v12  ;;  %2611 = vmatprep.mubr.f32.mxu0 %v3576_v27 }
  0x96   : > { %2821 = vmatprep.mubr.f32.mxu1 %v3595_v34 }
  0x97   : > { %3024 = vmatpush3.bf16.msra.mxu0 %v3767_v12 }
  0x98   : > { %3216 = vmatpush3.bf16.msra.mxu1 %v3767_v12  ;;  %3026 = vmatprep.subr.bf16.mxu0 %v3769_v50 }
  0x99   : > { %3218 = vmatprep.subr.bf16.mxu1 %v3769_v50 }
  0x9b   : > { %3028 = vmatpush3.bf16.msra.mxu0 %v3769_v50 }
  0x9c   : > { %3220 = vmatpush3.bf16.msra.mxu1 %v3769_v50  ;;  %3030 = vmatprep.subr.bf16.mxu0 %v3774_v60 }
  0x9d   : > { %3222 = vmatprep.subr.bf16.mxu1 %v3774_v60 }
  0x9f   : > { %3032 = vmatpush3.bf16.msra.mxu0 %v3774_v60 }
  0xa0   : > { %3224 = vmatpush3.bf16.msra.mxu1 %v3774_v60  ;;  %3034 = vmatprep.subr.bf16.mxu0 %v3776_v43 }
  0xa1   : > { %3226 = vmatprep.subr.bf16.mxu1 %v3776_v43 }
  0xa3   : > { %3036 = vmatpush3.bf16.msra.mxu0 %v3776_v43 }
  0xa4   : > { %3228 = vmatpush3.bf16.msra.mxu1 %v3776_v43  ;;  %3038 = vmatprep.subr.bf16.mxu0 %v3778_v47 }
  0xa5   : > { %3230 = vmatprep.subr.bf16.mxu1 %v3778_v47 }
  0xa7   : > { %3040 = vmatpush3.bf16.msra.mxu0 %v3778_v47 }
  0xa8   : > { %3232 = vmatpush3.bf16.msra.mxu1 %v3778_v47  ;;  %3042 = vmatprep.subr.bf16.mxu0 %v3780_v52 }
  0xa9   : > { %3234 = vmatprep.subr.bf16.mxu1 %v3780_v52 }
  0xab   : > { %3044 = vmatpush3.bf16.msra.mxu0 %v3780_v52 }
  0xac   : > { %3236 = vmatpush3.bf16.msra.mxu1 %v3780_v52  ;;  %3046 = vmatprep.subr.bf16.mxu0 %v3782_v53 }
  0xad   : > { %3238 = vmatprep.subr.bf16.mxu1 %v3782_v53 }
  0xaf   : > { %3048 = vmatpush3.bf16.msra.mxu0 %v3782_v53 }
  0xb0   : > { %3240 = vmatpush3.bf16.msra.mxu1 %v3782_v53  ;;  %3050 = vmatprep.subr.bf16.mxu0 %v3511_v10 }
  0xb1   : > { %3242 = vmatprep.subr.bf16.mxu1 %v3511_v10 }
  0xb2   : > { %2612 = vmatmul.mubr.f32.vlgmr.msra.gmra.mrb[0].mxu0 %v3605_v38 }
  0xb3   : > { %2822 = vmatmul.mubr.f32.vlgmr.msra.gmra.mrb[0].mxu1 %v3607_v39  ;;  %3052 = vmatpush3.bf16.msra.mxu0 %v3511_v10 }
  0xb4   : > { %3244 = vmatpush3.bf16.msra.mxu1 %v3511_v10  ;;  %3054 = vmatprep.subr.bf16.mxu0 %v3515_v13  ;;  %v218_v10 = vld [vmem:[%s3989_s3] sm:$0xf] }
  0xb5   : > { %3246 = vmatprep.subr.bf16.mxu1 %v3515_v13  ;;  %2646 = vmatprep.mubr.f32.mxu0 %v3576_v27 }
  0xb6   : > { %2856 = vmatprep.mubr.f32.mxu1 %v3595_v34 }
  0xb7   : > { %3056 = vmatpush3.bf16.msra.mxu0 %v3515_v13 }
  0xb8   : > { %3248 = vmatpush3.bf16.msra.mxu1 %v3515_v13  ;;  %3058 = vmatprep.subr.bf16.mxu0 %v3537_v16  ;;  %v1612_v13 = vsel %vm1610_vm0, %v218_v10, 0 }
  0xb9   : > { %3250 = vmatprep.subr.bf16.mxu1 %v3537_v16 }
  0xbb   : > { %3060 = vmatpush3.bf16.msra.mxu0 %v3537_v16 }
  0xbc   : > { %3252 = vmatpush3.bf16.msra.mxu1 %v3537_v16  ;;  %3062 = vmatprep.subr.bf16.mxu0 %v3567_v24  ;;  %v1615_v16 = vand.u32 4294901760, %v1612_v13 }
  0xbd   : > { %3254 = vmatprep.subr.bf16.mxu1 %v3567_v24 }
  0xbf   : > { %3064 = vmatpush3.bf16.msra.mxu0 %v3567_v24 }
  0xc0   : > { %3256 = vmatpush3.bf16.msra.mxu1 %v3567_v24  ;;  %3066 = vmatprep.subr.bf16.mxu0 %v3615_v40  ;;  %v1702_v24 = vsub.f32 %v1612_v13, %v1615_v16 }
  0xc1   : > { %3258 = vmatprep.subr.bf16.mxu1 %v3615_v40 }
  0xc2   : > { %v1703_v27 = vand.u32 4294901760, %v1702_v24 }
  0xc3   : > { %3068 = vmatpush3.bf16.msra.mxu0 %v3615_v40 }
  0xc4   : > { %3260 = vmatpush3.bf16.msra.mxu1 %v3615_v40  ;;  %3070 = vmatprep.subr.bf16.mxu0 %v3655_v57  ;;  %v1704_v34 = vsub.f32 %v1702_v24, %v1703_v27 }
  0xc5   : > { %3262 = vmatprep.subr.bf16.mxu1 %v3655_v57 }
  0xc6   : > { %v1705_v40 = vand.u32 4294901760, %v1704_v34 }
  0xc7   : > { %3072 = vmatpush3.bf16.msra.mxu0 %v3655_v57 }
  0xc8   : > { %3264 = vmatpush3.bf16.msra.mxu1 %v3655_v57  ;;  %3074 = vmatprep.subr.bf16.mxu0 %v3693_v11 }
  0xc9   : > { %3266 = vmatprep.subr.bf16.mxu1 %v3693_v11 }
  0xcb   : > { %3076 = vmatpush3.bf16.msra.mxu0 %v3693_v11 }
  0xcc   : > { %3268 = vmatpush3.bf16.msra.mxu1 %v3693_v11  ;;  %3078 = vmatprep.subr.bf16.mxu0 %v3695_v28 }
  0xcd   : > { %3270 = vmatprep.subr.bf16.mxu1 %v3695_v28 }
  0xcf   : > { %3080 = vmatpush3.bf16.msra.mxu0 %v3695_v28 }
  0xd0   : > { %3272 = vmatpush3.bf16.msra.mxu1 %v3695_v28  ;;  %2874 = vmatprep.subr.mxu0 %v1615_v16 }
  0xd1   : > { %2859 = vmatprep.subr.mxu1 %v1615_v16 }
  0xd2   : > { %2647 = vmatmul.mubr.f32.vlgmr.msra.gmra.mrb[0].mxu0 %v3605_v38 }
  0xd3   : > { %2857 = vmatmul.mubr.f32.vlgmr.msra.gmra.mrb[0].mxu1 %v3607_v39  ;;  %2875 = vmatpush3.msra.mxu0 %v1615_v16 }
  0xd4   : > { %2860 = vmatpush3.msra.mxu1 %v1615_v16  ;;  %2879 = vmatprep.subr.mxu0 %v1703_v27 }
  0xd5   : > { %2864 = vmatprep.subr.mxu1 %v1705_v40 }
 0x1a5   : > { %v2648_v38 = vpop.f32.mrb[0].mxu0 }
 0x1a6   : > { %v2858_v43 = vpop.f32.mrb[0].mxu1  ;;  %v1590_v39 = vmul.f32 0.03125, %v2648_v38  ;;  %v893_v55 = vpop.f32.mrb[1].mxu0 }
 0x1a7   : > { %v1579_v56 = vpop.f32.mrb[1].mxu1  ;;  %v1589_v57 = vmul.f32 0.03125, %v893_v55  ;;  %v1592_v9 = vmul.f32 0.03125, %v2858_v43 }
 0x1a8   : > { %v1594_v7 = vmul.f32 %v1590_v39, %v1590_v39  ;;  %v1591_v28 = vmul.f32 0.03125, %v1579_v56 }
 0x1a9   : > { %v1593_v11 = vmul.f32 %v1589_v57, %v1589_v57 }
 0x1aa   : > { %v1596_v8 = vsub.f32 %v1592_v9, %v1594_v7 }
 0x1ab   : > { %v1595_v63 = vsub.f32 %v1591_v28, %v1593_v11 }
 0x1ac   : > { %v1598_v1 = vmax.f32 %v1596_v8, 0.0 }
 0x1ad   : > { %v1597_v2 = vmax.f32 %v1595_v63, 0.0 }
 0x1ae   : > { %v1600_v3 = vadd.f32 1e-05, %v1598_v1 }
 0x1af   : > { %v1599_v4 = vadd.f32 1e-05, %v1597_v2 }
 0x1b0   : > { %3344 = vrsqrt.f32 %v1600_v3 }
 0x1b1   : > { %3346 = vrsqrt.f32 %v1599_v4 }
 0x1ba   : > { %v3345_v20 = vpop.eup %3344 }
 0x1bb   : > { %v3347_v32 = vpop.eup %3346  ;;  %v1608_v12 = vsel %vm1603_vm1, %v3345_v20, 0 }
 0x1bc   : > { %v1605_v50 = vsel %vm1603_vm1, %v3347_v32, 0  ;;  %v1690_v60 = vand.u32 4294901760, %v1608_v12 }
 0x1bd   : > { %v1680_v47 = vand.u32 4294901760, %v1605_v50 }
 0x1be   : > { %v1691_v52 = vsub.f32 %v1608_v12, %v1690_v60 }
 0x1bf   : > { %v1681_v53 = vsub.f32 %v1605_v50, %v1680_v47 }
 0x1c0   : > { %v1692_v25 = vand.u32 4294901760, %v1691_v52 }
 0x1c1   : > { %v1682_v19 = vand.u32 4294901760, %v1681_v53 }
 0x1c2   : > { %v1693_v26 = vsub.f32 %v1691_v52, %v1692_v25 }
 0x1c3   : > { %2876 = vmatprep.mubr.f32.mxu0 %v1682_v19  ;;  %v1683_v29 = vsub.f32 %v1681_v53, %v1682_v19 }
 0x1c4   : > { %2877 = vmatmul.mubr.f32.vlgmr.msra.gmra.mrb[2].mxu0 %v1692_v25  ;;  %v1694_v42 = vand.u32 4294901760, %v1693_v26 }
 0x1c5   : > { %2881 = vmatprep.mubr.f32.mxu0 %v1680_v47  ;;  %v1684_v41 = vand.u32 4294901760, %v1683_v29  ;;  %2880 = vmatpush3.msra.mxu0 %v1703_v27 }
 0x1c6   : > { %2884 = vmatprep.subr.mxu0 %v1615_v16 }
 0x1c7   : > { %2861 = vmatprep.mubr.f32.mxu1 %v1684_v41 }
 0x1c8   : > { %2862 = vmatmul.mubr.f32.vlgmr.msra.gmra.mrb[2].mxu1 %v1694_v42 }
 0x1c9   : > { %2865 = vmatpush3.msra.mxu1 %v1705_v40  ;;  %2866 = vmatprep.mubr.f32.mxu1 %v1680_v47 }
 0x1ca   : > { %2869 = vmatprep.subr.mxu1 %v1702_v24 }
 0x1cc   : > { %2882 = vmatmul.mubr.f32.vlgmr.msra.gmra.mrb[2].mxu0 %v1690_v60 }
 0x1cd   : > { %2886 = vmatprep.mubr.f32.mxu0 %v1680_v47  ;;  %2885 = vmatpush3.msra.mxu0 %v1615_v16 }
 0x1d0   : > { %2867 = vmatmul.mubr.f32.vlgmr.msra.gmra.mrb[2].mxu1 %v1690_v60 }
 0x1d1   : > { %2870 = vmatpush3.msra.mxu1 %v1702_v24  ;;  %2871 = vmatprep.mubr.f32.mxu1 %v1681_v53 }
 0x1d4   : > { %2887 = vmatmul.mubr.f32.vlgmr.msra.gmra.mrb[2].mxu0 %v1690_v60 }
 0x1d8   : > { %2872 = vmatmul.mubr.f32.vlgmr.msra.gmra.mrb[2].mxu1 %v1691_v52 }
 0x2a7   : > { %v2888_v45 = vpop.f32.mrb[2].mxu0 }
 0x2a8   : > { %v2093_v59 = vpop.f32.mrb[3].mxu0 }
 0x2ab   : > { %v2873_v17 = vpop.f32.mrb[2].mxu1 }
 0x2ac   : > { %v3273_v21 = vadd.f32 %v2888_v45, %v2873_v17  ;;  %v1852_v48 = vpop.f32.mrb[3].mxu1 }
 0x2ad   : > { %v3274_v51 = vadd.f32 %v2093_v59, %v1852_v48 }
 0x2ae   : > { %v2104_v49 = vmul.f32 %v3273_v21, %v3559_v23 }
 0x2af   : > { %v2103_v14 = vmul.f32 %v3274_v51, %v3557_v22 }
 0x2b0   : > { %v2112_v15 = vmul.f32 %v2198_v46, %v2104_v49 }
 0x2b1   : > { %v2111_v18 = vmul.f32 %v2198_v46, %v2103_v14 }
 0x2b2   : > { %2114 = vst [vmem:[%s191_s10 + $0x8] sm:$0xff] %v2112_v15 }
 0x2b3   : > { %2113 = vst [vmem:[%s191_s10] sm:$0xff] %v2111_v18 }
 0x2b4   : > { %3361 = shalt.err (!%p3358_p3)
}
 0x2b5   : > { %s3362_s29 = scalar_lea.hbm %s3943_s20, 256  ;;  %s3366_s6 = scalar_lea.hbm %s3990_s4, 512 }
 0x2b6   : > { %p3363_p4 = scmp.ne.s32.totalorder %s3943_s20, %s3362_s29  ;;  %p3367_p9 = scmp.lt.u32.totalorder %s3943_s20, %s3990_s4 }
 0x2b7   : > { %p3368_p10 = scmp.lt.u32.totalorder %s3366_s6, %s3362_s29  ;;  %p3370_p12 = scmp.lt.u32.totalorder %s3362_s29, %s3943_s20 }
 0x2b8   : > { %p3364_p7 = pnand %p3363_p4, %p3478_p5 }
 0x2b9   : > { %p3369_p11 = por %p3368_p10, %p3367_p9 }
 0x2ba   : > { %p3365_p8 = pneg %p3364_p7 }
 0x2bb   : > { %p3371_p13 = por %p3370_p12, %p3369_p11 }
 0x2bd   : > { %p3372_p0 = pnand %p3371_p13, %p3365_p8 }
 0x2bf   : > { %3375 = shalt.err (!%p3372_p0)
}
 0x2c0   : > { %s3413_s7 = smov 128   ;;  %s3414_s10 = smov 8  }
 0x2c1   : > { %3303 = dma.vmem_to_hbm [thread:$0]  (%p3478_p5), %s3938_s11, 256, %s3943_s20, %s3945_s22, %s3413_s7, %s3413_s7, %s3414_s10  }
 0x2c2 PF: > { %p3309_p1 = scmp.ge.s32.totalorder %s3410_s18, 2  ;;  %s2144_s12 = sand.u32 1, %s3398_s15  }
 0x2c3   : > { %s2145_s13 = scalar_lea.sflag [#allocation3], %s2144_s12 }
 0x2c4   : > { %p3306_p2 = pnand %p3309_p1, %p3482_p6 }
 0x2c6   : > { %3393 = dma.done.wait (!%p3306_p2), %s2145_s13, 256  }
 0x2c7   : > { %3395 = vsyncadd (!%p3306_p2), %s2145_s13, 4294967040  ;;  %p14_p3 = scmp.ge.s32.totalorder %s3465_s21, 4   ;;  %s4001_s15 = smov %s3402_s16 }
 0x2c8   : > { %s4002_s16 = smov %s3406_s17  ;;  %s4003_s17 = smov %s3476_s24 }
 0x2c9   : > { %s4004_s18 = smov %s3465_s21  ;;  %16 = sbr.rel (!%p14_p3) target bundleno = 3 (0x3), region = 71 }
 0x2d0   :  { %2150 = vsyncpa [#allocation3], 1 }
 0x2d1   :  { %2152 = vsyncpa [#allocation3 + $0x1], 1 }

</bundles_post_ra>
